<compile_context>
chip_gen: v7x
topology: tpu7x:2x2x1
jax: 0.10.0
libtpu: 0.0.40
codegen_flags: <defaults>
</compile_context>

<pallas_src>
import jax
import jax.numpy as jnp
import numpy as np
from jax import lax
from jax.experimental import pallas as pl
from jax.experimental.pallas import tpu as pltpu

_VMEM_LIMIT_BYTES = 40 * 1024 * 1024


# --------------------------------------------------------------------------
# helpers
# --------------------------------------------------------------------------
def _round_up(x, m):
    return (x + m - 1) // m * m


def _pow2_tile(n128, target):
    """Largest power-of-two multiple of 128 that is <= min(target, n128)."""
    t = 128
    while t * 2 <= min(target, n128):
        t *= 2
    return t


def _pad2(a, rows, cols):
    r, c = a.shape
    return jnp.pad(a, ((0, rows - r), (0, cols - c)))


def _split_hi_lo(z_f32):
    """z ~= hi + lo with both planes bf16 (adj is exact 0/1 in bf16, so the
    aggregation A @ hi + A @ lo reproduces the f32 result to ~16 mantissa bits)."""
    z_hi = z_f32.astype(jnp.bfloat16)
    z_lo = (z_f32 - z_hi.astype(jnp.float32)).astype(jnp.bfloat16)
    return z_hi, z_lo


# --------------------------------------------------------------------------
# Kernel 0: per-node feature transform of layer 1 (pre-linear fused with the
# first GCNConv weight and the source-side degree scaling).
#   z1 = ((x @ Wpre + bpre) @ W1) * dinv
# --------------------------------------------------------------------------
def _transform_kernel(x_ref, wpre_ref, bpre_ref, w1_ref, dinv_ref, o_ref):
    h = jnp.dot(x_ref[...], wpre_ref[...],
                preferred_element_type=jnp.float32) + bpre_ref[...]
    z = jnp.dot(h, w1_ref[...], preferred_element_type=jnp.float32)
    o_ref[...] = z * dinv_ref[...]


# --------------------------------------------------------------------------
# Kernel 1: layer-1 aggregation + bias + ReLU, then the layer-2 weight
# transform and source-side scaling fused into the finalize:
#   h1 = relu(dinv * (A @ z1) + b1) ;  z2 = (h1 @ W2) * dinv
# Grid: (dest-row tiles, source-col tiles); f32 acc in VMEM scratch.
# Aggregation runs as two native-bf16 MXU matmuls (hi/lo split of z1).
# --------------------------------------------------------------------------
def _agg_relu_transform_kernel(adj_ref, z_ref, dinv_ref, b_ref, w_ref,
                               o_ref, acc_ref):
    k = pl.program_id(1)

    @pl.when(k == 0)
    def _():
        acc_ref[...] = jnp.zeros_like(acc_ref)

    a = adj_ref[...]                                  # bf16, exact 0/1
    z_hi, z_lo = _split_hi_lo(z_ref[...])
    acc_ref[...] += (jnp.dot(a, z_hi, preferred_element_type=jnp.float32)
                     + jnp.dot(a, z_lo, preferred_element_type=jnp.float32))

    @pl.when(k == pl.num_programs(1) - 1)
    def _():
        h = jnp.maximum(dinv_ref[...] * acc_ref[...] + b_ref[...], 0.0)
        o_ref[...] = jnp.dot(h, w_ref[...],
                             preferred_element_type=jnp.float32) * dinv_ref[...]


# --------------------------------------------------------------------------
# Kernel 2: layer-2 aggregation + bias + L2 row-normalization (F.normalize):
#   out = (dinv * (A @ z2) + b2) * rsqrt(sumsq)
# --------------------------------------------------------------------------
def _agg_l2norm_kernel(adj_ref, z_ref, dinv_ref, b_ref, o_ref, acc_ref):
    k = pl.program_id(1)

    @pl.when(k == 0)
    def _():
        acc_ref[...] = jnp.zeros_like(acc_ref)

    a = adj_ref[...]
    z_hi, z_lo = _split_hi_lo(z_ref[...])
    acc_ref[...] += (jnp.dot(a, z_hi, preferred_element_type=jnp.float32)
                     + jnp.dot(a, z_lo, preferred_element_type=jnp.float32))

    @pl.when(k == pl.num_programs(1) - 1)
    def _():
        out = dinv_ref[...] * acc_ref[...] + b_ref[...]
        sumsq = jnp.sum(out * out, axis=-1, keepdims=True)
        o_ref[...] = out * lax.rsqrt(jnp.maximum(sumsq, 1e-24))  # eps=1e-12 on the norm


# --------------------------------------------------------------------------
# Full GCN forward (feature_pre=True, layer_num=2, dropout -> eval identity)
# --------------------------------------------------------------------------
def gcn_forward(params, x, adj):
    n, fin = x.shape
    fd = params["pre_w"].shape[1]
    hd = params["first_w"].shape[1]
    od = params["out_w"].shape[1]

    # ---- tile selection (no divisor cliff: pad N up to a tile multiple) ----
    n128 = _round_up(n, 128)
    tm = _pow2_tile(n128, 1024)     # destination-row tile
    tk = _pow2_tile(n128, 2048)     # source-column (reduction) tile; tm | tk
    n_pad = _round_up(n, tk)        # multiple of both tm and tk

    fin_p, fd_p, hd_p, od_p = (_round_up(d, 128) for d in (fin, fd, hd, od))

    # ---- inputs / parameters (lane-dense zero padding is exact) ------------
    xp = _pad2(x.astype(jnp.float32), n_pad, fin_p)
    # adjacency: single padded bf16 array (0/1 exact in bf16); no f32 copy.
    adj_p = _pad2(adj.astype(jnp.bfloat16), n_pad, n_pad)

    wpre = _pad2(params["pre_w"], fin_p, fd_p)
    bpre = _pad2(params["pre_b"], 1, fd_p)
    w1 = _pad2(params["first_w"], fd_p, hd_p)
    b1 = _pad2(params["first_b"], 1, hd_p)
    w2 = _pad2(params["out_w"], hd_p, od_p)
    b2 = _pad2(params["out_b"], 1, od_p)

    # symmetric GCN normalization from the UNPADDED adjacency; padded rows get
    # dinv = 0, so they stay exactly zero and cannot pollute real rows.
    deg = jnp.sum(adj.astype(jnp.float32), axis=1, keepdims=True)
    dinv = jnp.where(deg > 0, lax.rsqrt(deg), 0.0).astype(jnp.float32)
    dinv = jnp.pad(dinv, ((0, n_pad - n), (0, 0)))

    # ---- Kernel 0: fused pre-linear + first-layer weight -------------------
    z1 = pl.pallas_call(
        _transform_kernel,
        grid=(n_pad // tm,),
        in_specs=[
            pl.BlockSpec((tm, fin_p), lambda i: (i, 0)),
            pl.BlockSpec((fin_p, fd_p), lambda i: (0, 0)),
            pl.BlockSpec((1, fd_p), lambda i: (0, 0)),
            pl.BlockSpec((fd_p, hd_p), lambda i: (0, 0)),
            pl.BlockSpec((tm, 1), lambda i: (i, 0)),
        ],
        out_specs=pl.BlockSpec((tm, hd_p), lambda i: (i, 0)),
        out_shape=jax.ShapeDtypeStruct((n_pad, hd_p), jnp.float32),
        compiler_params=pltpu.CompilerParams(
            dimension_semantics=("parallel",),
            vmem_limit_bytes=_VMEM_LIMIT_BYTES),
    )(xp, wpre, bpre, w1, dinv)

    grid = (n_pad // tm, n_pad // tk)
    cparams = pltpu.CompilerParams(
        dimension_semantics=("parallel", "arbitrary"),
        vmem_limit_bytes=_VMEM_LIMIT_BYTES)

    # ---- Kernel 1: layer-1 aggregation + relu + layer-2 transform ----------
    z2 = pl.pallas_call(
        _agg_relu_transform_kernel,
        grid=grid,
        in_specs=[
            pl.BlockSpec((tm, tk), lambda i, k: (i, k)),      # adj tile (bf16)
            pl.BlockSpec((tk, hd_p), lambda i, k: (k, 0)),    # z1 source tile (f32)
            pl.BlockSpec((tm, 1), lambda i, k: (i, 0)),       # dinv (dest rows)
            pl.BlockSpec((1, hd_p), lambda i, k: (0, 0)),     # b1
            pl.BlockSpec((hd_p, od_p), lambda i, k: (0, 0)),  # W2
        ],
        out_specs=pl.BlockSpec((tm, od_p), lambda i, k: (i, 0)),
        out_shape=jax.ShapeDtypeStruct((n_pad, od_p), jnp.float32),
        scratch_shapes=[pltpu.VMEM((tm, hd_p), jnp.float32)],
        compiler_params=cparams,
    )(adj_p, z1, dinv, b1, w2)

    # ---- Kernel 2: layer-2 aggregation + bias + L2 normalize ---------------
    out = pl.pallas_call(
        _agg_l2norm_kernel,
        grid=grid,
        in_specs=[
            pl.BlockSpec((tm, tk), lambda i, k: (i, k)),
            pl.BlockSpec((tk, od_p), lambda i, k: (k, 0)),
            pl.BlockSpec((tm, 1), lambda i, k: (i, 0)),
            pl.BlockSpec((1, od_p), lambda i, k: (0, 0)),
        ],
        out_specs=pl.BlockSpec((tm, od_p), lambda i, k: (i, 0)),
        out_shape=jax.ShapeDtypeStruct((n_pad, od_p), jnp.float32),
        scratch_shapes=[pltpu.VMEM((tm, od_p), jnp.float32)],
        compiler_params=cparams,
    )(adj_p, z2, dinv, b2)

    return out[:n, :od]


# --------------------------------------------------------------------------
# Pure-JAX reference for correctness checking
# --------------------------------------------------------------------------
def gcn_forward_ref(params, x, adj):
    deg = adj.sum(axis=1, keepdims=True)
    dinv = jnp.where(deg > 0, 1.0 / jnp.sqrt(deg), 0.0)
    norm_adj = dinv * adj * dinv.T                      # D^-1/2 (A+I) D^-1/2
    h = x @ params["pre_w"] + params["pre_b"]
    h = norm_adj @ (h @ params["first_w"]) + params["first_b"]
    h = jnp.maximum(h, 0.0)
    out = norm_adj @ (h @ params["out_w"]) + params["out_b"]
    out = out / jnp.maximum(
        jnp.sqrt((out * out).sum(-1, keepdims=True)), 1e-12)
    return out


# --------------------------------------------------------------------------
if __name__ == "__main__":
    key = jax.random.PRNGKey(0)
    N = 300                      # number of graph nodes (multi-tile + ragged padding)
    E = 900                      # number of edges
    input_dim, feature_dim, hidden_dim, output_dim = 16, 32, 32, 16

    keys = jax.random.split(key, 10)
    x = jax.random.normal(keys[0], (N, input_dim), jnp.float32)
    src = jax.random.randint(keys[1], (E,), 0, N)
    dst = jax.random.randint(keys[2], (E,), 0, N)
    edge_index = jnp.stack([src, dst])   # (2, E): row0 = source, row1 = target

    # dense adjacency with self-loops: adj[dst, src] = 1 (parallel edges dedup)
    adj = jnp.zeros((N, N), jnp.float32).at[edge_index[1], edge_index[0]].set(1.0)
    adj = jnp.maximum(adj, jnp.eye(N, dtype=jnp.float32))

    def glorot(k, shape):
        fan_in, fan_out = shape[0], shape[-1]
        lim = (6.0 / (fan_in + fan_out)) ** 0.5
        return jax.random.uniform(k, shape, jnp.float32, -lim, lim)

    params = {
        # nn.Linear(input_dim, feature_dim)   (weight stored as (in, out))
        "pre_w": glorot(keys[3], (input_dim, feature_dim)),
        "pre_b": 0.1 * jax.random.normal(keys[4], (1, feature_dim), jnp.float32),
        # GCNConv(feature_dim, hidden_dim): weight (in, out) + bias
        "first_w": glorot(keys[5], (feature_dim, hidden_dim)),
        "first_b": 0.1 * jax.random.normal(keys[6], (1, hidden_dim), jnp.float32),
        # GCNConv(hidden_dim, output_dim)
        "out_w": glorot(keys[7], (hidden_dim, output_dim)),
        "out_b": 0.1 * jax.random.normal(keys[8], (1, output_dim), jnp.float32),
    }

    out = gcn_forward(params, x, adj)
    out = jax.block_until_ready(out)

    ref = gcn_forward_ref(params, x, adj)
    np.testing.assert_allclose(np.asarray(out), np.asarray(ref),
                               rtol=1e-4, atol=1e-4)
    print("KERNEL_OK")
</pallas_src>

<mosaic_0001>
module attributes {stable_mosaic.version = 11 : i64} {
  func.func @_transform_kernel(%arg0: i32, %arg1: memref<256x128xf32, #tpu.memory_space<vmem>>, %arg2: memref<128x128xf32, #tpu.memory_space<vmem>>, %arg3: memref<1x128xf32, #tpu.memory_space<vmem>>, %arg4: memref<128x128xf32, #tpu.memory_space<vmem>>, %arg5: memref<256x1xf32, #tpu.memory_space<vmem>>, %arg6: memref<256x128xf32, #tpu.memory_space<vmem>>) attributes {dimension_semantics = [#tpu.dimension_semantics<parallel>], iteration_bounds = array<i64: 2>, scalar_prefetch = 0 : i64, scratch_operands = 0 : i64, tpu.core_type = #tpu.core_type<tc>, window_params = [{transform_indices = @transform_0, window_bounds = array<i64: 256, 128>}, {pipeline_mode = #tpu.pipeline_mode<synchronous>, transform_indices = @transform_1, window_bounds = array<i64: 128, 128>}, {pipeline_mode = #tpu.pipeline_mode<synchronous>, transform_indices = @transform_2, window_bounds = array<i64: 1, 128>}, {pipeline_mode = #tpu.pipeline_mode<synchronous>, transform_indices = @transform_3, window_bounds = array<i64: 128, 128>}, {transform_indices = @transform_4, window_bounds = array<i64: 256, 1>}, {transform_indices = @transform_5, window_bounds = array<i64: 256, 128>}]} {
    %c0 = arith.constant 0 : index
    %c0_0 = arith.constant 0 : index
    %0 = vector.load %arg1[%c0, %c0_0] : memref<256x128xf32, #tpu.memory_space<vmem>>, vector<256x128xf32>
    %c0_1 = arith.constant 0 : index
    %c0_2 = arith.constant 0 : index
    %1 = vector.load %arg2[%c0_1, %c0_2] : memref<128x128xf32, #tpu.memory_space<vmem>>, vector<128x128xf32>
    %cst = arith.constant dense<0.000000e+00> : vector<256x128xf32>
    %2 = tpu.matmul %0, %1, %cst {dimension_numbers = #tpu.dot_dimension_numbers<[1], [0], [0], [1], [0, 0, 1, 1], [], []>} : vector<256x128xf32>, vector<128x128xf32>, vector<256x128xf32> -> vector<256x128xf32>
    %c0_3 = arith.constant 0 : index
    %c0_4 = arith.constant 0 : index
    %3 = vector.load %arg3[%c0_3, %c0_4] : memref<1x128xf32, #tpu.memory_space<vmem>>, vector<1x128xf32>
    %4 = vector.broadcast %3 : vector<1x128xf32> to vector<256x128xf32>
    %5 = arith.addf %2, %4 : vector<256x128xf32>
    %c0_5 = arith.constant 0 : index
    %c0_6 = arith.constant 0 : index
    %6 = vector.load %arg4[%c0_5, %c0_6] : memref<128x128xf32, #tpu.memory_space<vmem>>, vector<128x128xf32>
    %cst_7 = arith.constant dense<0.000000e+00> : vector<256x128xf32>
    %7 = tpu.matmul %5, %6, %cst_7 {dimension_numbers = #tpu.dot_dimension_numbers<[1], [0], [0], [1], [0, 0, 1, 1], [], []>} : vector<256x128xf32>, vector<128x128xf32>, vector<256x128xf32> -> vector<256x128xf32>
    %c0_8 = arith.constant 0 : index
    %c0_9 = arith.constant 0 : index
    %8 = vector.load %arg5[%c0_8, %c0_9] : memref<256x1xf32, #tpu.memory_space<vmem>>, vector<256x1xf32>
    %9 = vector.broadcast %8 : vector<256x1xf32> to vector<256x128xf32>
    %10 = arith.mulf %7, %9 : vector<256x128xf32>
    %c0_10 = arith.constant 0 : index
    %c0_11 = arith.constant 0 : index
    %11 = vector.load %arg6[%c0_10, %c0_11] : memref<256x128xf32, #tpu.memory_space<vmem>>, vector<256x128xf32>
    tpu.vector_store %arg6[%c0_10, %c0_11], %10 {strides = array<i32>} : memref<256x128xf32, #tpu.memory_space<vmem>>, vector<256x128xf32>,
    return
  }
  func.func @transform_0(%arg0: i32) -> (i32, i32) {
    %c0_i32 = arith.constant 0 : i32
    %c0_i32_0 = arith.constant 0 : i32
    return %arg0, %c0_i32 : i32, i32
  }
  func.func @transform_1(%arg0: i32) -> (i32, i32) {
    %c0_i32 = arith.constant 0 : i32
    %c0_i32_0 = arith.constant 0 : i32
    %c0_i32_1 = arith.constant 0 : i32
    return %c0_i32, %c0_i32_0 : i32, i32
  }
  func.func @transform_2(%arg0: i32) -> (i32, i32) {
    %c0_i32 = arith.constant 0 : i32
    %c0_i32_0 = arith.constant 0 : i32
    %c0_i32_1 = arith.constant 0 : i32
    return %c0_i32, %c0_i32_0 : i32, i32
  }
  func.func @transform_3(%arg0: i32) -> (i32, i32) {
    %c0_i32 = arith.constant 0 : i32
    %c0_i32_0 = arith.constant 0 : i32
    %c0_i32_1 = arith.constant 0 : i32
    return %c0_i32, %c0_i32_0 : i32, i32
  }
  func.func @transform_4(%arg0: i32) -> (i32, i32) {
    %c0_i32 = arith.constant 0 : i32
    %c0_i32_0 = arith.constant 0 : i32
    return %arg0, %c0_i32 : i32, i32
  }
  func.func @transform_5(%arg0: i32) -> (i32, i32) {
    %c0_i32 = arith.constant 0 : i32
    %c0_i32_0 = arith.constant 0 : i32
    return %arg0, %c0_i32 : i32, i32
  }
}

</mosaic_0001>

<bundles_post_ra>
// kernel: tpu_custom_call.1
= control target key start
LH: loop header
LB: loop body
LE: loop exit
PB: predicated region body
PF: predicated region fallthrough
CT: control target
= control target key end

     0   :  { %10 = vsyncpa [#allocation3], 0  ;;  %s2066_s0 = inlined_call_operand.vmem [shape: f32[512,128], index: 0, kind: input, shape index: {}]   ;;  %s2067_s1 = inlined_call_operand.hbm [shape: f32[128,128], index: 1, kind: input, shape index: {}]   ;;  %s2068_s2 = inlined_call_operand.vmem [shape: f32[1,128], index: 2, kind: input, shape index: {}]   ;;  %s2069_s3 = inlined_call_operand.hbm [shape: f32[128,128], index: 3, kind: input, shape index: {}]   ;;  %s2070_s4 = inlined_call_operand.vmem [shape: f32[512,1], index: 4, kind: input, shape index: {}]   ;;  %s2071_s5 = inlined_call_operand.hbm [shape: f32[512,128], index: 5, kind: output, shape index: {}]  }
   0x1   :  { %11 = vsyncpa [#allocation6], 0 }
   0x2   :  { %12 = vsyncpa [#allocation4], 0 }
   0x3   :  { %14 = vsyncpa [#allocation4 + $0x1], 0  ;;  %s1738_s18 = smov 0   ;;  %s1740_s19 = smov 0  }
   0x4   :  { %s1742_s20 = smov 0   ;;  %s1744_s21 = smov 0  }
   0x5 LB: > { %s1759_s22 = sadd.s32 4294967295, %s1698_s21   ;;  %s1165_s23 = sadd.s32 4294967294, %s1698_s21   ;;  %s1698_s21 = sphi %s1744_s21, %s2089_s21   ;;  %s1694_s20 = sphi %s1742_s20, %s2088_s20   ;;  %s1690_s19 = sphi %s1740_s19, %s2087_s19   ;;  %s1686_s18 = sphi %s1738_s18, %s2086_s18  }
   0x6   : > { %s1763_s24 = sadd.s32 1, %s1698_s21   ;;  %s142_s25 = sadd.s32 1, %s1694_s20 }
   0x7   : > { %s139_s26 = ssub.s32 %s1698_s21, %s1763_s24  ;;  %p152_p0 = scmp.ne.s32.totalorder %s1694_s20, %s1690_s19 }
   0x8   : > { %p140_p1 = scmp.eq.s32.totalorder %s139_s26, 0  ;;  %p153_p2 = scmp.eq.s32.totalorder %s1759_s22, 1 }
   0x9   : > { %p158_p3 = scmp.ne.s32.totalorder %s1690_s19, %s1686_s18  ;;  %p159_p4 = scmp.eq.s32.totalorder %s1165_s23, 1 }
   0xa   : > { %s1774_s27 = scalar_select %p140_p1, %s1694_s20, %s142_s25  }
   0xb   : > { %p1776_p5 = por %p153_p2, %p152_p0  ;;  %p1780_p6 = por %p159_p4, %p158_p3 }
   0xc   : > { %p1166_p7 = scmp.ge.s32.totalorder %s1698_s21, 1  ;;  %p166_p8 = scmp.lt.s32.totalorder %s1698_s21, 3 }
   0xd   : > { %s2075_s28 = scalar_select %p1776_p5, 1, 0 }
   0xe   : > { %s2076_s29 = scalar_select %p1780_p6, 1, 0 }
   0xf   : > { %p2072_p9 = scmp.eq.s32.totalorder %s1759_s22, 0  ;;  %p1787_p10 = pnand %p1166_p7, %p166_p8 }
  0x10   : > { %s1700_s6 = smov [#allocation2]   ;;  %s1701_s9 = smov [#allocation5]  }
  0x11   : > { %s2077_s30 = scalar_select %p1787_p10, 1, 0 }
  0x12   : > { %s178_s7 = sshll.u32 %s1700_s6, 4  ;;  %p1515_p11 = pneg %p1787_p10  ;;  %s179_s7 = int_to_ptr.vmem [resolvable:$true] %s178_s7 }
  0x13   : > { %s194_s10 = sshll.u32 %s1701_s9, 4  ;;  %s1572_s13 = scalar_lea.hbm %s2067_s1, 2048  ;;  %s1799_s10 = int_to_ptr.vmem [resolvable:$true] %s194_s10 }
  0x14   : > { %p1795_p12 = pnand %p2072_p9, %p1515_p11  ;;  %p1573_p13 = scmp.ne.s32.totalorder %s2067_s1, %s1572_s13 }
  0x15   : > { %p1579_p3 = scmp.lt.u32.totalorder %s1572_s13, %s2067_s1 }
  0x16   : > { %p1574_p0 = pneg %p1795_p12 }
  0x18   : > { %p1575_p1 = pnand %p1574_p0, %p1573_p13 }
  0x1a   : > { %p1576_p2 = pneg %p1575_p1 }
  0x1c   : > { %p1581_p4 = pnand %p1579_p3, %p1576_p2 }
  0x1e   : > { %1584 = shalt.err (!%p1581_p4)
}
  0x1f   : > { %s1585_s23 = scalar_lea.vmem %s179_s7, 2048  ;;  %p1593_p9 = scmp.lt.s32.totalorder %s179_s7, %s179_s7 }
  0x20   : > { %p1586_p7 = scmp.ne.s32.totalorder %s179_s7, %s1585_s23  ;;  %p1594_p6 = scmp.lt.s32.totalorder %s1585_s23, %s1585_s23 }
  0x22   : > { %p1588_p8 = pnand %p1586_p7, %p1574_p0  ;;  %p1595_p5 = por %p1594_p6, %p1593_p9 }
  0x24   : > { %p1589_p11 = pneg %p1588_p8 }
  0x26   : > { %p1596_p10 = pnand %p1595_p5, %p1589_p11 }
  0x28   : > { %1599 = shalt.err (!%p1596_p10)
}
  0x29   : > { %s1702_s25 = smov 128   ;;  %s1703_s26 = smov 8  }
  0x2a   : > { %1518 = dma.hbm_to_vmem [thread:$0]  (!%p1795_p12), %s2067_s1, 2048, %s179_s7, [#allocation3], %s1702_s25, %s1702_s25, %s1703_s26  }
  0x2b   : > { %s1600_s13 = scalar_lea.hbm %s2069_s3, 2048 }
  0x2c   : > { %p1601_p13 = scmp.ne.s32.totalorder %s2069_s3, %s1600_s13  ;;  %p1607_p9 = scmp.lt.u32.totalorder %s1600_s13, %s2069_s3 }
  0x2e   : > { %p1603_p5 = pnand %p1601_p13, %p1574_p0 }
  0x30   : > { %p1604_p6 = pneg %p1603_p5 }
  0x32   : > { %p1609_p10 = pnand %p1607_p9, %p1604_p6 }
  0x34   : > { %1612 = shalt.err (!%p1609_p10)
}
  0x35   : > { %s1613_s7 = scalar_lea.vmem %s1799_s10, 2048  ;;  %p1621_p4 = scmp.lt.s32.totalorder %s1799_s10, %s1799_s10 }
  0x36   : > { %p1614_p1 = scmp.ne.s32.totalorder %s1799_s10, %s1613_s7  ;;  %p1622_p7 = scmp.lt.s32.totalorder %s1613_s7, %s1613_s7 }
  0x38   : > { %p1616_p2 = pnand %p1614_p1, %p1574_p0  ;;  %p1623_p8 = por %p1622_p7, %p1621_p4 }
  0x3a   : > { %p1617_p3 = pneg %p1616_p2 }
  0x3c   : > { %p1624_p11 = pnand %p1623_p8, %p1617_p3 }
  0x3e   : > { %1627 = shalt.err (!%p1624_p11)
}
  0x3f   : > { %1521 = dma.hbm_to_vmem [thread:$0]  (!%p1795_p12), %s2069_s3, 2048, %s1799_s10, [#allocation6], %s1702_s25, %s1702_s25, %s1703_s26  }
  0x40   : > { %p2079_p13 = scmp.ne.s32.totalorder %s2077_s30, 0 }
  0x41   : > { %p2080_p5 = scmp.eq.s32.totalorder (!%p2079_p13), %s1759_s22, 0 }
  0x42   : > { %228 = sbr.rel (%p2079_p13) target bundleno = 619 (0x26b), region = 40 }
  0x49   : > { %1673 = dma.done.wait (%p2080_p5), [#allocation3], 2048   ;;  %p2081_p0 = pmov %p2080_p5 }
  0x4b   : > { %1675 = vsyncadd (%p2081_p0), [#allocation3], 4294965248  ;;  %p2082_p6 = pmov %p2081_p0 }
  0x4c   : > { %p2083_p9 = pmov %p2081_p0 }
  0x4d   : > { %1677 = dma.done.wait (%p2082_p6), [#allocation6], 2048  }
  0x4e   : > { %1679 = vsyncadd (%p2083_p9), [#allocation6], 4294965248  ;;  %s1174_s8 = sshll.u32 %s1759_s22, 5  ;;  %v310_v0 = vld [vmem:[#allocation2] sm:$0xff]  ;;  %v311_v1 = vld [vmem:[#allocation2 + $0x8] sm:$0xff]  ;;  %s262_s15 = sand.u32 1, %s1690_s19  }
  0x4f   : > { %p266_p10 = scmp.lt.s32.totalorder %s1174_s8, 63  ;;  %v312_v2 = vld [vmem:[#allocation2 + $0x10] sm:$0xff]  ;;  %v1441_v3 = vpack.c.bf16 %v311_v1, %v310_v0  ;;  %v313_v4 = vld [vmem:[#allocation2 + $0x18] sm:$0xff]  ;;  %v314_v6 = vld [vmem:[#allocation2 + $0x20] sm:$0xff]  ;;  %s1173_s16 = sshll.u32 %s262_s15, 8 }
  0x50   : > { %v1445_v5 = vpack.c.bf16 %v313_v4, %v312_v2  ;;  %v315_v7 = vld [vmem:[#allocation2 + $0x28] sm:$0xff]  ;;  %v316_v10 = vld [vmem:[#allocation2 + $0x30] sm:$0xff]  ;;  %v317_v11 = vld [vmem:[#allocation2 + $0x38] sm:$0xff]  ;;  %s1980_s17 = scalar_lea.vmem [#allocation7], %s1173_s16  ;;  %s1184_s7 = sshll.u32 %s1759_s22, 12 }
  0x51   : > { %s2091_s8 = smov (!%p266_p10, %s1174_s8), 63  ;;  %1442 = vmatprep.subr.bf16.mxu0 %v1441_v3  ;;  %v1449_v8 = vpack.c.bf16 %v315_v7, %v314_v6  ;;  %v1453_v12 = vpack.c.bf16 %v317_v11, %v316_v10  ;;  %v318_v13 = vld [vmem:[#allocation2 + $0x40] sm:$0xff]  ;;  %v319_v14 = vld [vmem:[#allocation2 + $0x48] sm:$0xff]  ;;  %v320_v16 = vld [vmem:[#allocation2 + $0x50] sm:$0xff]  ;;  %s1069_s23 = sshll.u32 %s1980_s17, 4  ;;  %s2019_s23 = int_to_ptr.vmem [resolvable:$true] %s1069_s23 }
  0x52   : > { %s1175_s30 = sshll.u32 %s2091_s8, 3  ;;  %1444 = vmatpush3.bf16.msra.mxu0 %v1441_v3  ;;  %v1457_v15 = vpack.c.bf16 %v319_v14, %v318_v13  ;;  %v321_v17 = vld [vmem:[#allocation2 + $0x58] sm:$0xff]  ;;  %v558_v18 = vld [vmem:[#allocation5] sm:$0xff]  ;;  %v559_v19 = vld [vmem:[#allocation5 + $0x8] sm:$0xff]  ;;  %s2025_s22 = scalar_lea.sflag [#allocation4], %s262_s15 }
  0x53   : > { %s1867_s26 = scalar_lea.vmem %s2066_s0, %s1175_s30  ;;  %1446 = vmatprep.subr.bf16.mxu0 %v1445_v5  ;;  %v560_v20 = vld [vmem:[#allocation5 + $0x10] sm:$0xff]  ;;  %v1461_v21 = vpack.c.bf16 %v321_v17, %v320_v16  ;;  %v322_v22 = vld [vmem:[#allocation2 + $0x60] sm:$0xff]  ;;  %v1473_v23 = vpack.c.bf16 %v559_v19, %v558_v18  ;;  %v561_v24 = vld [vmem:[#allocation5 + $0x18] sm:$0xff]  ;;  %s1906_s12 = scalar_lea.vmem %s2070_s4, %s1175_s30  ;;  %v1704_v16 = vmov 0  }
  0x54   : > { %v278_v9 = vld [vmem:[%s1867_s26] sm:$0xff]  ;;  %v323_v25 = vld [vmem:[#allocation2 + $0x68] sm:$0xff]  ;;  %v1477_v26 = vpack.c.bf16 %v561_v24, %v560_v20  ;;  %v324_v30 = vld [vmem:[#allocation2 + $0x70] sm:$0xff]  ;;  %1571 = vset.pattern.permute.xlu1 %v1704_v16  ;;  %1570 = vset.pattern.permute.xlu0 %v1704_v16  ;;  %s2017_s30 = scalar_lea.hbm %s2071_s5, %s1184_s7  ;;  %s1628_s10 = scalar_lea.vmem %s2019_s23, 4096 }
  0x55   : > { %1313 = vmatprep.mubr.f32.mxu0 %v278_v9  ;;  %v562_v27 = vld [vmem:[#allocation5 + $0x20] sm:$0xff]  ;;  %v563_v28 = vld [vmem:[#allocation5 + $0x28] sm:$0xff]  ;;  %1474 = vmatprep.subr.bf16.mxu1 %v1473_v23  ;;  %v1465_v29 = vpack.c.bf16 %v323_v25, %v322_v22  ;;  %v325_v32 = vld [vmem:[#allocation2 + $0x78] sm:$0xff]  ;;  %p1629_p12 = scmp.ne.s32.totalorder %s2019_s23, %s1628_s10  ;;  %p2084_p1 = scmp.ne.s32.totalorder %s2075_s28, 0 }
  0x56   : > { %1448 = vmatpush3.bf16.msra.mxu0 %v1445_v5  ;;  %1476 = vmatpush3.bf16.msra.mxu1 %v1473_v23  ;;  %v1481_v31 = vpack.c.bf16 %v563_v28, %v562_v27  ;;  %v564_v33 = vld [vmem:[#allocation5 + $0x30] sm:$0xff]  ;;  %v565_v34 = vld [vmem:[#allocation5 + $0x38] sm:$0xff]  ;;  %v1469_v35 = vpack.c.bf16 %v325_v32, %v324_v30  ;;  %v566_v37 = vld [vmem:[#allocation5 + $0x40] sm:$0xff]  ;;  %s1705_s25 = smov [#allocation7]  }
  0x57   : > { %1450 = vmatprep.subr.bf16.mxu0 %v1449_v8  ;;  %1478 = vmatprep.subr.bf16.mxu1 %v1477_v26  ;;  %v1485_v36 = vpack.c.bf16 %v565_v34, %v564_v33  ;;  %v567_v38 = vld [vmem:[#allocation5 + $0x48] sm:$0xff]  ;;  %v568_v40 = vld [vmem:[#allocation5 + $0x50] sm:$0xff]  ;;  %v569_v41 = vld [vmem:[#allocation5 + $0x58] sm:$0xff]  ;;  %p1630_p2 = pnand %p1629_p12, %p2084_p1 }
  0x58   : > { %v1489_v39 = vpack.c.bf16 %v567_v38, %v566_v37  ;;  %v279_v42 = vld [vmem:[%s1867_s26 + $0x8] sm:$0xff]  ;;  %v280_v43 = vld [vmem:[%s1867_s26 + $0x10] sm:$0xff]  ;;  %v1493_v44 = vpack.c.bf16 %v569_v41, %v568_v40  ;;  %v570_v45 = vld [vmem:[#allocation5 + $0x60] sm:$0xff] }
  0x59   : > { %v571_v46 = vld [vmem:[#allocation5 + $0x68] sm:$0xff]  ;;  %v281_v47 = vld [vmem:[%s1867_s26 + $0x18] sm:$0xff]  ;;  %v282_v48 = vld [vmem:[%s1867_s26 + $0x20] sm:$0xff]  ;;  %p1631_p3 = pneg %p1630_p2 }
  0x5a   : > { %1452 = vmatpush3.bf16.msra.mxu0 %v1449_v8  ;;  %1480 = vmatpush3.bf16.msra.mxu1 %v1477_v26  ;;  %v1497_v49 = vpack.c.bf16 %v571_v46, %v570_v45  ;;  %v283_v50 = vld [vmem:[%s1867_s26 + $0x28] sm:$0xff]  ;;  %v284_v51 = vld [vmem:[%s1867_s26 + $0x30] sm:$0xff]  ;;  %v285_v52 = vld [vmem:[%s1867_s26 + $0x38] sm:$0xff] }
  0x5b   : > { %1454 = vmatprep.subr.bf16.mxu0 %v1453_v12  ;;  %1482 = vmatprep.subr.bf16.mxu1 %v1481_v31  ;;  %v286_v53 = vld [vmem:[%s1867_s26 + $0x40] sm:$0xff]  ;;  %v287_v54 = vld [vmem:[%s1867_s26 + $0x48] sm:$0xff]  ;;  %v288_v55 = vld [vmem:[%s1867_s26 + $0x50] sm:$0xff] }
  0x5c   : > { %v289_v56 = vld [vmem:[%s1867_s26 + $0x58] sm:$0xff]  ;;  %v290_v57 = vld [vmem:[%s1867_s26 + $0x60] sm:$0xff]  ;;  %v291_v58 = vld [vmem:[%s1867_s26 + $0x68] sm:$0xff] }
  0x5d   : > { %v292_v59 = vld [vmem:[%s1867_s26 + $0x70] sm:$0xff]  ;;  %v293_v60 = vld [vmem:[%s1867_s26 + $0x78] sm:$0xff]  ;;  %v294_v61 = vld [vmem:[%s1867_s26 + $0x80] sm:$0xff] }
  0x5e   : > { %1456 = vmatpush3.bf16.msra.mxu0 %v1453_v12  ;;  %1484 = vmatpush3.bf16.msra.mxu1 %v1481_v31  ;;  %v295_v62 = vld [vmem:[%s1867_s26 + $0x88] sm:$0xff]  ;;  %v296_v63 = vld [vmem:[%s1867_s26 + $0x90] sm:$0xff]  ;;  %v297_v0 = vld [vmem:[%s1867_s26 + $0x98] sm:$0xff] }
  0x5f   : > { %1458 = vmatprep.subr.bf16.mxu0 %v1457_v15  ;;  %1486 = vmatprep.subr.bf16.mxu1 %v1485_v36  ;;  %v298_v1 = vld [vmem:[%s1867_s26 + $0xa0] sm:$0xff]  ;;  %v299_v2 = vld [vmem:[%s1867_s26 + $0xa8] sm:$0xff]  ;;  %v300_v3 = vld [vmem:[%s1867_s26 + $0xb0] sm:$0xff] }
  0x60   : > { %v301_v4 = vld [vmem:[%s1867_s26 + $0xb8] sm:$0xff]  ;;  %v302_v5 = vld [vmem:[%s1867_s26 + $0xc0] sm:$0xff]  ;;  %v303_v6 = vld [vmem:[%s1867_s26 + $0xc8] sm:$0xff] }
  0x61   : > { %v304_v7 = vld [vmem:[%s1867_s26 + $0xd0] sm:$0xff]  ;;  %v305_v8 = vld [vmem:[%s1867_s26 + $0xd8] sm:$0xff]  ;;  %v306_v9 = vld [vmem:[%s1867_s26 + $0xe0] sm:$0xff] }
  0x62   : > { %1460 = vmatpush3.bf16.msra.mxu0 %v1457_v15  ;;  %1488 = vmatpush3.bf16.msra.mxu1 %v1485_v36  ;;  %v307_v10 = vld [vmem:[%s1867_s26 + $0xe8] sm:$0xff]  ;;  %v308_v11 = vld [vmem:[%s1867_s26 + $0xf0] sm:$0xff]  ;;  %v309_v12 = vld [vmem:[%s1867_s26 + $0xf8] sm:$0xff]  ;;  %s1632_s26 = sshll.u32 %s1705_s25, 4  ;;  %s1633_s26 = int_to_ptr.vmem [resolvable:$false] %s1632_s26 }
  0x63   : > { %1462 = vmatprep.subr.bf16.mxu0 %v1461_v21  ;;  %1490 = vmatprep.subr.bf16.mxu1 %v1489_v39  ;;  %v572_v13 = vld [vmem:[#allocation5 + $0x70] sm:$0xff]  ;;  %v573_v14 = vld [vmem:[#allocation5 + $0x78] sm:$0xff]  ;;  %v799_v18 = vld [vmem:[%s1906_s12] sm:$0xff]  ;;  %s1634_s9 = scalar_lea.vmem %s1633_s26, 8192  ;;  %p1635_p4 = scmp.lt.s32.totalorder %s2019_s23, %s1633_s26 }
  0x64   : > { %v1501_v15 = vpack.c.bf16 %v573_v14, %v572_v13  ;;  %v801_v17 = vld [vmem:[%s1906_s12 + $0x10] sm:$0xff]  ;;  %833 = vperm.xlu0 %1570, %v799_v18   ;;  %v802_v19 = vld [vmem:[%s1906_s12 + $0x18] sm:$0xff]  ;;  %v800_v20 = vld [vmem:[%s1906_s12 + $0x8] sm:$0xff]  ;;  %p1636_p7 = scmp.lt.s32.totalorder %s1634_s9, %s1628_s10 }
  0x65   : > { %843 = vperm.xlu1 %1571, %v801_v17   ;;  %v803_v22 = vld [vmem:[%s1906_s12 + $0x20] sm:$0xff]  ;;  %v806_v23 = vld [vmem:[%s1906_s12 + $0x38] sm:$0xff]  ;;  %v805_v24 = vld [vmem:[%s1906_s12 + $0x30] sm:$0xff] }
  0x66   : > { %1464 = vmatpush3.bf16.msra.mxu0 %v1461_v21  ;;  %1492 = vmatpush3.bf16.msra.mxu1 %v1489_v39  ;;  %v804_v21 = vld [vmem:[%s1906_s12 + $0x28] sm:$0xff]  ;;  %v807_v26 = vld [vmem:[%s1906_s12 + $0x40] sm:$0xff]  ;;  %v810_v27 = vld [vmem:[%s1906_s12 + $0x58] sm:$0xff]  ;;  %p1637_p8 = por %p1636_p7, %p1635_p4 }
  0x67   : > { %1466 = vmatprep.subr.bf16.mxu0 %v1465_v29  ;;  %1494 = vmatprep.subr.bf16.mxu1 %v1493_v44  ;;  %v808_v25 = vld [vmem:[%s1906_s12 + $0x48] sm:$0xff]  ;;  %v809_v28 = vld [vmem:[%s1906_s12 + $0x50] sm:$0xff]  ;;  %v811_v30 = vld [vmem:[%s1906_s12 + $0x60] sm:$0xff] }
  0x68   : > { %838 = vperm.xlu0 %1570, %v800_v20   ;;  %v814_v31 = vld [vmem:[%s1906_s12 + $0x78] sm:$0xff]  ;;  %v813_v32 = vld [vmem:[%s1906_s12 + $0x70] sm:$0xff]  ;;  %v816_v33 = vld [vmem:[%s1906_s12 + $0x88] sm:$0xff]  ;;  %p1638_p11 = pnand %p1637_p8, %p1631_p3 }
  0x69   : > { %848 = vperm.xlu1 %1571, %v802_v19   ;;  %v815_v34 = vld [vmem:[%s1906_s12 + $0x80] sm:$0xff]  ;;  %v817_v36 = vld [vmem:[%s1906_s12 + $0x90] sm:$0xff]  ;;  %v820_v37 = vld [vmem:[%s1906_s12 + $0xa8] sm:$0xff] }
  0x6a   : > { %1468 = vmatpush3.bf16.msra.mxu0 %v1465_v29  ;;  %1496 = vmatpush3.bf16.msra.mxu1 %v1493_v44  ;;  %v812_v29 = vld [vmem:[%s1906_s12 + $0x68] sm:$0xff]  ;;  %v819_v38 = vld [vmem:[%s1906_s12 + $0xa0] sm:$0xff]  ;;  %v822_v39 = vld [vmem:[%s1906_s12 + $0xb8] sm:$0xff] }
  0x6b   : > { %1470 = vmatprep.subr.bf16.mxu0 %v1469_v35  ;;  %1498 = vmatprep.subr.bf16.mxu1 %v1497_v49  ;;  %v821_v40 = vld [vmem:[%s1906_s12 + $0xb0] sm:$0xff]  ;;  %v824_v41 = vld [vmem:[%s1906_s12 + $0xc8] sm:$0xff]  ;;  %v827_v46 = vld [vmem:[%s1906_s12 + $0xe0] sm:$0xff] }
  0x6c   : > { %853 = vperm.xlu0 %1570, %v803_v22   ;;  %v825_v44 = vld [vmem:[%s1906_s12 + $0xd0] sm:$0xff]  ;;  %v828_v45 = vld [vmem:[%s1906_s12 + $0xe8] sm:$0xff] }
  0x6d   : > { %858 = vperm.xlu1 %1571, %v804_v21  }
  0x6e   : > { %1472 = vmatpush3.bf16.msra.mxu0 %v1469_v35  ;;  %1500 = vmatpush3.bf16.msra.mxu1 %v1497_v49  ;;  %v818_v35 = vld [vmem:[%s1906_s12 + $0x98] sm:$0xff]  ;;  %v1943_v49 = vld [vmem:[%s2068_s2] ss:$0 sm:$0xff] }
  0x6f   : > { %1502 = vmatprep.subr.bf16.mxu1 %v1501_v15 }
  0x70   : > { %863 = vperm.xlu0 %1570, %v805_v24  }
  0x71   : > { %1314 = vmatmul.mubr.f32.vlgmr.msra.gmra.mrb[0].mxu0 %v279_v42  ;;  %868 = vperm.xlu1 %1571, %v806_v23   ;;  %v823_v42 = vld [vmem:[%s1906_s12 + $0xc0] sm:$0xff] }
  0x72   : > { %1316 = vmatprep.mubr.f32.mxu0 %v280_v43  ;;  %1504 = vmatpush3.bf16.msra.mxu1 %v1501_v15  ;;  %v826_v43 = vld [vmem:[%s1906_s12 + $0xd8] sm:$0xff] }
  0x74   : > { %873 = vperm.xlu0 %1570, %v807_v26  }
  0x75   : > { %1317 = vmatmul.mubr.f32.gmra.mrb[2].mxu0 %v281_v47  ;;  %878 = vperm.xlu1 %1571, %v808_v25   ;;  %v830_v47 = vld [vmem:[%s1906_s12 + $0xf8] sm:$0xff] }
  0x76   : > { %1319 = vmatprep.mubr.f32.mxu0 %v282_v48  ;;  %v829_v48 = vld [vmem:[%s1906_s12 + $0xf0] sm:$0xff] }
  0x78   : > { %883 = vperm.xlu0 %1570, %v809_v28  }
  0x79   : > { %1320 = vmatmul.mubr.f32.gmra.mrb[4].mxu0 %v283_v50  ;;  %888 = vperm.xlu1 %1571, %v810_v27  }
  0x7a   : > { %1322 = vmatprep.mubr.f32.mxu0 %v284_v51 }
  0x7c   : > { %893 = vperm.xlu0 %1570, %v811_v30  }
  0x7d   : > { %1323 = vmatmul.mubr.f32.gmra.mrb[6].mxu0 %v285_v52  ;;  %898 = vperm.xlu1 %1571, %v812_v29  }
  0x7e   : > { %1325 = vmatprep.mubr.f32.mxu0 %v286_v53 }
  0x80   : > { %903 = vperm.xlu0 %1570, %v813_v32  }
  0x81   : > { %1326 = vmatmul.mubr.f32.gmra.mrb[8].mxu0 %v287_v54  ;;  %908 = vperm.xlu1 %1571, %v814_v31  }
  0x82   : > { %1328 = vmatprep.mubr.f32.mxu0 %v288_v55 }
  0x84   : > { %913 = vperm.xlu0 %1570, %v815_v34  }
  0x85   : > { %1329 = vmatmul.mubr.f32.gmra.mrb[10].mxu0 %v289_v56  ;;  %918 = vperm.xlu1 %1571, %v816_v33  }
  0x86   : > { %1331 = vmatprep.mubr.f32.mxu0 %v290_v57 }
  0x88   : > { %923 = vperm.xlu0 %1570, %v817_v36  }
  0x89   : > { %1332 = vmatmul.mubr.f32.gmra.mrb[12].mxu0 %v291_v58  ;;  %928 = vperm.xlu1 %1571, %v818_v35  }
  0x8a   : > { %1334 = vmatprep.mubr.f32.mxu0 %v292_v59 }
  0x8c   : > { %933 = vperm.xlu0 %1570, %v819_v38  }
  0x8d   : > { %1335 = vmatmul.mubr.f32.gmra.mrb[14].mxu0 %v293_v60  ;;  %938 = vperm.xlu1 %1571, %v820_v37  }
  0x8e   : > { %1337 = vmatprep.mubr.f32.mxu0 %v294_v61 }
  0x90   : > { %943 = vperm.xlu0 %1570, %v821_v40  }
  0x91   : > { %1338 = vmatmul.mubr.f32.gmra.mrb[16].mxu0 %v295_v62  ;;  %948 = vperm.xlu1 %1571, %v822_v39  }
  0x92   : > { %1340 = vmatprep.mubr.f32.mxu0 %v296_v63 }
  0x94   : > { %953 = vperm.xlu0 %1570, %v823_v42  }
  0x95   : > { %1341 = vmatmul.mubr.f32.gmra.mrb[18].mxu0 %v297_v0  ;;  %958 = vperm.xlu1 %1571, %v824_v41  }
  0x96   : > { %1343 = vmatprep.mubr.f32.mxu0 %v298_v1 }
  0x98   : > { %963 = vperm.xlu0 %1570, %v825_v44  }
  0x99   : > { %1344 = vmatmul.mubr.f32.gmra.mrb[20].mxu0 %v299_v2  ;;  %968 = vperm.xlu1 %1571, %v826_v43  }
  0x9a   : > { %1346 = vmatprep.mubr.f32.mxu0 %v300_v3 }
  0x9c   : > { %973 = vperm.xlu0 %1570, %v827_v46  }
  0x9d   : > { %1347 = vmatmul.mubr.f32.gmra.mrb[22].mxu0 %v301_v4  ;;  %978 = vperm.xlu1 %1571, %v828_v45  }
  0x9e   : > { %1349 = vmatprep.mubr.f32.mxu0 %v302_v5 }
  0xa0   : > { %983 = vperm.xlu0 %1570, %v829_v48  }
  0xa1   : > { %1350 = vmatmul.mubr.f32.gmra.mrb[24].mxu0 %v303_v6  ;;  %988 = vperm.xlu1 %1571, %v830_v47  }
  0xa2   : > { %1352 = vmatprep.mubr.f32.mxu0 %v304_v7 }
  0xa5   : > { %1353 = vmatmul.mubr.f32.gmra.mrb[26].mxu0 %v305_v8 }
  0xa6   : > { %1355 = vmatprep.mubr.f32.mxu0 %v306_v9 }
  0xa9   : > { %1356 = vmatmul.mubr.f32.gmra.mrb[28].mxu0 %v307_v10 }
  0xaa   : > { %1358 = vmatprep.mubr.f32.mxu0 %v308_v11 }
  0xad   : > { %1359 = vmatmul.mubr.f32.gmra.mrb[30].mxu0 %v309_v12 }
 0x144   : > { %v1315_v50 = vpop.f32.mrb[0].mxu0 }
 0x145   : > { %v399_v51 = vpop.f32.mrb[1].mxu0  ;;  %v405_v53 = vadd.f32 %v1315_v50, %v1943_v49 }
 0x146   : > { %v400_v52 = vadd.f32 %v1943_v49, %v399_v51  ;;  %v844_v51 = vpop.permute.xlu1 %843 }
 0x148   : > { %v1318_v54 = vpop.f32.mrb[2].mxu0  ;;  %1393 = vmatprep.mubr.f32.mxu1 %v400_v52  ;;  %v834_v52 = vpop.permute.xlu0 %833 }
 0x149   : > { %v409_v55 = vpop.f32.mrb[3].mxu0  ;;  %1394 = vmatmul.mubr.f32.vlgmr.msra.gmra.mrb[0].mxu1 %v405_v53  ;;  %v415_v57 = vadd.f32 %v1318_v54, %v1943_v49 }
 0x14a   : > { %v410_v56 = vadd.f32 %v1943_v49, %v409_v55  ;;  %v849_v53 = vpop.permute.xlu1 %848 }
 0x14c   : > { %v1321_v58 = vpop.f32.mrb[4].mxu0  ;;  %1396 = vmatprep.mubr.f32.mxu1 %v410_v56  ;;  %v839_v54 = vpop.permute.xlu0 %838 }
 0x14d   : > { %v419_v59 = vpop.f32.mrb[5].mxu0  ;;  %1397 = vmatmul.mubr.f32.gmra.mrb[2].mxu1 %v415_v57  ;;  %v425_v61 = vadd.f32 %v1321_v58, %v1943_v49 }
 0x14e   : > { %v420_v60 = vadd.f32 %v1943_v49, %v419_v59  ;;  %v859_v55 = vpop.permute.xlu1 %858 }
 0x150   : > { %v1324_v62 = vpop.f32.mrb[6].mxu0  ;;  %1399 = vmatprep.mubr.f32.mxu1 %v420_v60  ;;  %v854_v56 = vpop.permute.xlu0 %853 }
 0x151   : > { %v429_v63 = vpop.f32.mrb[7].mxu0  ;;  %1400 = vmatmul.mubr.f32.gmra.mrb[4].mxu1 %v425_v61  ;;  %v435_v1 = vadd.f32 %v1324_v62, %v1943_v49 }
 0x152   : > { %v430_v0 = vadd.f32 %v1943_v49, %v429_v63  ;;  %v869_v57 = vpop.permute.xlu1 %868 }
 0x154   : > { %v1327_v2 = vpop.f32.mrb[8].mxu0  ;;  %1402 = vmatprep.mubr.f32.mxu1 %v430_v0  ;;  %v864_v58 = vpop.permute.xlu0 %863 }
 0x155   : > { %v439_v3 = vpop.f32.mrb[9].mxu0  ;;  %1403 = vmatmul.mubr.f32.gmra.mrb[6].mxu1 %v435_v1  ;;  %v445_v5 = vadd.f32 %v1327_v2, %v1943_v49 }
 0x156   : > { %v440_v4 = vadd.f32 %v1943_v49, %v439_v3  ;;  %v879_v59 = vpop.permute.xlu1 %878 }
 0x158   : > { %v1330_v6 = vpop.f32.mrb[10].mxu0  ;;  %1405 = vmatprep.mubr.f32.mxu1 %v440_v4  ;;  %v874_v60 = vpop.permute.xlu0 %873 }
 0x159   : > { %v449_v7 = vpop.f32.mrb[11].mxu0  ;;  %1406 = vmatmul.mubr.f32.gmra.mrb[8].mxu1 %v445_v5  ;;  %v455_v9 = vadd.f32 %v1330_v6, %v1943_v49 }
 0x15a   : > { %v450_v8 = vadd.f32 %v1943_v49, %v449_v7  ;;  %v889_v61 = vpop.permute.xlu1 %888 }
 0x15c   : > { %v1333_v10 = vpop.f32.mrb[12].mxu0  ;;  %1408 = vmatprep.mubr.f32.mxu1 %v450_v8  ;;  %v884_v63 = vpop.permute.xlu0 %883 }
 0x15d   : > { %v459_v11 = vpop.f32.mrb[13].mxu0  ;;  %1409 = vmatmul.mubr.f32.gmra.mrb[10].mxu1 %v455_v9  ;;  %v465_v13 = vadd.f32 %v1333_v10, %v1943_v49 }
 0x15e   : > { %v460_v12 = vadd.f32 %v1943_v49, %v459_v11  ;;  %v899_v5 = vpop.permute.xlu1 %898 }
 0x160   : > { %v1336_v14 = vpop.f32.mrb[14].mxu0  ;;  %1411 = vmatprep.mubr.f32.mxu1 %v460_v12  ;;  %v894_v7 = vpop.permute.xlu0 %893 }
 0x161   : > { %v469_v15 = vpop.f32.mrb[15].mxu0  ;;  %1412 = vmatmul.mubr.f32.gmra.mrb[12].mxu1 %v465_v13  ;;  %v475_v17 = vadd.f32 %v1336_v14, %v1943_v49 }
 0x162   : > { %v470_v16 = vadd.f32 %v1943_v49, %v469_v15  ;;  %v909_v12 = vpop.permute.xlu1 %908 }
 0x164   : > { %v1339_v18 = vpop.f32.mrb[16].mxu0  ;;  %1414 = vmatprep.mubr.f32.mxu1 %v470_v16  ;;  %v904_v14 = vpop.permute.xlu0 %903 }
 0x165   : > { %v479_v19 = vpop.f32.mrb[17].mxu0  ;;  %1415 = vmatmul.mubr.f32.gmra.mrb[14].mxu1 %v475_v17  ;;  %v485_v21 = vadd.f32 %v1339_v18, %v1943_v49 }
 0x166   : > { %v480_v20 = vadd.f32 %v1943_v49, %v479_v19 }
 0x168   : > { %v1342_v22 = vpop.f32.mrb[18].mxu0  ;;  %1417 = vmatprep.mubr.f32.mxu1 %v480_v20 }
 0x169   : > { %v489_v23 = vpop.f32.mrb[19].mxu0  ;;  %1418 = vmatmul.mubr.f32.gmra.mrb[16].mxu1 %v485_v21  ;;  %v495_v25 = vadd.f32 %v1342_v22, %v1943_v49  ;;  %v919_v21 = vpop.permute.xlu1 %918 }
 0x16a   : > { %v490_v24 = vadd.f32 %v1943_v49, %v489_v23  ;;  %v914_v23 = vpop.permute.xlu0 %913 }
 0x16c   : > { %v1345_v26 = vpop.f32.mrb[20].mxu0  ;;  %1420 = vmatprep.mubr.f32.mxu1 %v490_v24 }
 0x16d   : > { %v499_v27 = vpop.f32.mrb[21].mxu0  ;;  %1421 = vmatmul.mubr.f32.gmra.mrb[18].mxu1 %v495_v25  ;;  %v505_v29 = vadd.f32 %v1345_v26, %v1943_v49 }
 0x16e   : > { %v500_v28 = vadd.f32 %v1943_v49, %v499_v27 }
 0x170   : > { %v1348_v30 = vpop.f32.mrb[22].mxu0  ;;  %1423 = vmatprep.mubr.f32.mxu1 %v500_v28  ;;  %v929_v28 = vpop.permute.xlu1 %928 }
 0x171   : > { %v509_v31 = vpop.f32.mrb[23].mxu0  ;;  %1424 = vmatmul.mubr.f32.gmra.mrb[20].mxu1 %v505_v29  ;;  %v515_v33 = vadd.f32 %v1348_v30, %v1943_v49  ;;  %v924_v30 = vpop.permute.xlu0 %923 }
 0x172   : > { %v510_v32 = vadd.f32 %v1943_v49, %v509_v31 }
 0x174   : > { %v1351_v34 = vpop.f32.mrb[24].mxu0  ;;  %1426 = vmatprep.mubr.f32.mxu1 %v510_v32 }
 0x175   : > { %v519_v35 = vpop.f32.mrb[25].mxu0  ;;  %1427 = vmatmul.mubr.f32.gmra.mrb[22].mxu1 %v515_v33  ;;  %v525_v37 = vadd.f32 %v1351_v34, %v1943_v49 }
 0x176   : > { %v520_v36 = vadd.f32 %v1943_v49, %v519_v35 }
 0x178   : > { %v1354_v38 = vpop.f32.mrb[26].mxu0  ;;  %1429 = vmatprep.mubr.f32.mxu1 %v520_v36 }
 0x179   : > { %v529_v39 = vpop.f32.mrb[27].mxu0  ;;  %1430 = vmatmul.mubr.f32.gmra.mrb[24].mxu1 %v525_v37  ;;  %v535_v41 = vadd.f32 %v1354_v38, %v1943_v49  ;;  %v939_v37 = vpop.permute.xlu1 %938 }
 0x17a   : > { %v530_v40 = vadd.f32 %v1943_v49, %v529_v39  ;;  %v934_v39 = vpop.permute.xlu0 %933 }
 0x17c   : > { %v1357_v42 = vpop.f32.mrb[28].mxu0  ;;  %1432 = vmatprep.mubr.f32.mxu1 %v530_v40 }
 0x17d   : > { %v539_v43 = vpop.f32.mrb[29].mxu0  ;;  %1433 = vmatmul.mubr.f32.gmra.mrb[26].mxu1 %v535_v41  ;;  %v545_v45 = vadd.f32 %v1357_v42, %v1943_v49 }
 0x17e   : > { %v540_v44 = vadd.f32 %v1943_v49, %v539_v43 }
 0x180   : > { %v1360_v46 = vpop.f32.mrb[30].mxu0  ;;  %1435 = vmatprep.mubr.f32.mxu1 %v540_v44  ;;  %v949_v44 = vpop.permute.xlu1 %948 }
 0x181   : > { %v549_v47 = vpop.f32.mrb[31].mxu0  ;;  %1436 = vmatmul.mubr.f32.gmra.mrb[28].mxu1 %v545_v45  ;;  %v555_v50 = vadd.f32 %v1360_v46, %v1943_v49  ;;  %v944_v46 = vpop.permute.xlu0 %943 }
 0x182   : > { %v550_v48 = vadd.f32 %v1943_v49, %v549_v47 }
 0x184   : > { %1438 = vmatprep.mubr.f32.mxu1 %v550_v48 }
 0x185   : > { %1439 = vmatmul.mubr.f32.gmra.mrb[30].mxu1 %v555_v50 }
 0x21c   : > { %v1395_v62 = vpop.f32.mrb[0].mxu1 }
 0x21d   : > { %v992_v0 = vmul.f32 %v1395_v62, %v839_v54  ;;  %v640_v49 = vpop.f32.mrb[1].mxu1  ;;  %v959_v54 = vpop.permute.xlu1 %958 }
 0x21e   : > { %v991_v1 = vmul.f32 %v834_v52, %v640_v49 }
 0x21f   : > { %1024 = vst [vmem:[%s1980_s17 + $0x8] sm:$0xff] %v992_v0 }
 0x220   : > { %1023 = vst [vmem:[%s1980_s17] sm:$0xff] %v991_v1  ;;  %v1398_v2 = vpop.f32.mrb[2].mxu1 }
 0x221   : > { %v994_v3 = vmul.f32 %v1398_v2, %v849_v53  ;;  %v650_v4 = vpop.f32.mrb[3].mxu1 }
 0x222   : > { %v993_v6 = vmul.f32 %v844_v51, %v650_v4 }
 0x223   : > { %1026 = vst [vmem:[%s1980_s17 + $0x18] sm:$0xff] %v994_v3 }
 0x224   : > { %1025 = vst [vmem:[%s1980_s17 + $0x10] sm:$0xff] %v993_v6  ;;  %v1401_v8 = vpop.f32.mrb[4].mxu1 }
 0x225   : > { %v996_v9 = vmul.f32 %v1401_v8, %v859_v55  ;;  %v660_v10 = vpop.f32.mrb[5].mxu1 }
 0x226   : > { %v995_v11 = vmul.f32 %v854_v56, %v660_v10  ;;  %v954_v56 = vpop.permute.xlu0 %953 }
 0x227   : > { %1028 = vst [vmem:[%s1980_s17 + $0x28] sm:$0xff] %v996_v9 }
 0x228   : > { %1027 = vst [vmem:[%s1980_s17 + $0x20] sm:$0xff] %v995_v11  ;;  %v1404_v13 = vpop.f32.mrb[6].mxu1 }
 0x229   : > { %v998_v15 = vmul.f32 %v1404_v13, %v869_v57  ;;  %v670_v16 = vpop.f32.mrb[7].mxu1 }
 0x22a   : > { %v997_v17 = vmul.f32 %v864_v58, %v670_v16 }
 0x22b   : > { %1030 = vst [vmem:[%s1980_s17 + $0x38] sm:$0xff] %v998_v15 }
 0x22c   : > { %1029 = vst [vmem:[%s1980_s17 + $0x30] sm:$0xff] %v997_v17  ;;  %v1407_v18 = vpop.f32.mrb[8].mxu1 }
 0x22d   : > { %v1000_v19 = vmul.f32 %v1407_v18, %v879_v59  ;;  %v680_v20 = vpop.f32.mrb[9].mxu1 }
 0x22e   : > { %v999_v22 = vmul.f32 %v874_v60, %v680_v20 }
 0x22f   : > { %1032 = vst [vmem:[%s1980_s17 + $0x48] sm:$0xff] %v1000_v19 }
 0x230   : > { %1031 = vst [vmem:[%s1980_s17 + $0x40] sm:$0xff] %v999_v22  ;;  %v1410_v24 = vpop.f32.mrb[10].mxu1 }
 0x231   : > { %v1002_v25 = vmul.f32 %v1410_v24, %v889_v61  ;;  %v690_v26 = vpop.f32.mrb[11].mxu1  ;;  %v969_v61 = vpop.permute.xlu1 %968 }
 0x232   : > { %v1001_v27 = vmul.f32 %v884_v63, %v690_v26  ;;  %v964_v63 = vpop.permute.xlu0 %963 }
 0x233   : > { %1034 = vst [vmem:[%s1980_s17 + $0x58] sm:$0xff] %v1002_v25 }
 0x234   : > { %1033 = vst [vmem:[%s1980_s17 + $0x50] sm:$0xff] %v1001_v27  ;;  %v1413_v29 = vpop.f32.mrb[12].mxu1 }
 0x235   : > { %v1004_v31 = vmul.f32 %v1413_v29, %v899_v5  ;;  %v700_v32 = vpop.f32.mrb[13].mxu1  ;;  %v979_v5 = vpop.permute.xlu1 %978 }
 0x236   : > { %v1003_v33 = vmul.f32 %v894_v7, %v700_v32  ;;  %v974_v7 = vpop.permute.xlu0 %973 }
 0x237   : > { %1036 = vst [vmem:[%s1980_s17 + $0x68] sm:$0xff] %v1004_v31 }
 0x238   : > { %1035 = vst [vmem:[%s1980_s17 + $0x60] sm:$0xff] %v1003_v33  ;;  %v1416_v34 = vpop.f32.mrb[14].mxu1 }
 0x239   : > { %v1006_v35 = vmul.f32 %v1416_v34, %v909_v12  ;;  %v710_v36 = vpop.f32.mrb[15].mxu1  ;;  %v989_v12 = vpop.permute.xlu1 %988 }
 0x23a   : > { %v1005_v38 = vmul.f32 %v904_v14, %v710_v36  ;;  %v984_v14 = vpop.permute.xlu0 %983 }
 0x23b   : > { %1038 = vst [vmem:[%s1980_s17 + $0x78] sm:$0xff] %v1006_v35 }
 0x23c   : > { %1037 = vst [vmem:[%s1980_s17 + $0x70] sm:$0xff] %v1005_v38  ;;  %v1419_v40 = vpop.f32.mrb[16].mxu1 }
 0x23d   : > { %v1008_v41 = vmul.f32 %v1419_v40, %v919_v21  ;;  %v720_v42 = vpop.f32.mrb[17].mxu1 }
 0x23e   : > { %v1007_v43 = vmul.f32 %v914_v23, %v720_v42 }
 0x23f   : > { %1040 = vst [vmem:[%s1980_s17 + $0x88] sm:$0xff] %v1008_v41 }
 0x240   : > { %1039 = vst [vmem:[%s1980_s17 + $0x80] sm:$0xff] %v1007_v43  ;;  %v1422_v45 = vpop.f32.mrb[18].mxu1 }
 0x241   : > { %v1010_v47 = vmul.f32 %v1422_v45, %v929_v28  ;;  %v730_v48 = vpop.f32.mrb[19].mxu1 }
 0x242   : > { %v1009_v50 = vmul.f32 %v924_v30, %v730_v48 }
 0x243   : > { %1042 = vst [vmem:[%s1980_s17 + $0x98] sm:$0xff] %v1010_v47 }
 0x244   : > { %1041 = vst [vmem:[%s1980_s17 + $0x90] sm:$0xff] %v1009_v50  ;;  %v1425_v51 = vpop.f32.mrb[20].mxu1 }
 0x245   : > { %v1012_v52 = vmul.f32 %v1425_v51, %v939_v37  ;;  %v740_v53 = vpop.f32.mrb[21].mxu1 }
 0x246   : > { %v1011_v55 = vmul.f32 %v934_v39, %v740_v53 }
 0x247   : > { %1044 = vst [vmem:[%s1980_s17 + $0xa8] sm:$0xff] %v1012_v52 }
 0x248   : > { %1043 = vst [vmem:[%s1980_s17 + $0xa0] sm:$0xff] %v1011_v55  ;;  %v1428_v57 = vpop.f32.mrb[22].mxu1 }
 0x249   : > { %v1014_v58 = vmul.f32 %v1428_v57, %v949_v44  ;;  %v750_v59 = vpop.f32.mrb[23].mxu1 }
 0x24a   : > { %v1013_v60 = vmul.f32 %v944_v46, %v750_v59 }
 0x24b   : > { %1046 = vst [vmem:[%s1980_s17 + $0xb8] sm:$0xff] %v1014_v58 }
 0x24c   : > { %1045 = vst [vmem:[%s1980_s17 + $0xb0] sm:$0xff] %v1013_v60  ;;  %v1431_v62 = vpop.f32.mrb[24].mxu1 }
 0x24d   : > { %v1016_v0 = vmul.f32 %v1431_v62, %v959_v54  ;;  %v760_v49 = vpop.f32.mrb[25].mxu1 }
 0x24e   : > { %v1015_v1 = vmul.f32 %v954_v56, %v760_v49 }
 0x24f   : > { %1048 = vst [vmem:[%s1980_s17 + $0xc8] sm:$0xff] %v1016_v0 }
 0x250   : > { %1047 = vst [vmem:[%s1980_s17 + $0xc0] sm:$0xff] %v1015_v1  ;;  %v1434_v2 = vpop.f32.mrb[26].mxu1 }
 0x251   : > { %v1018_v3 = vmul.f32 %v1434_v2, %v969_v61  ;;  %v770_v4 = vpop.f32.mrb[27].mxu1 }
 0x252   : > { %v1017_v6 = vmul.f32 %v964_v63, %v770_v4 }
 0x253   : > { %1050 = vst [vmem:[%s1980_s17 + $0xd8] sm:$0xff] %v1018_v3 }
 0x254   : > { %1049 = vst [vmem:[%s1980_s17 + $0xd0] sm:$0xff] %v1017_v6  ;;  %v1437_v8 = vpop.f32.mrb[28].mxu1 }
 0x255   : > { %v1020_v9 = vmul.f32 %v1437_v8, %v979_v5  ;;  %v780_v10 = vpop.f32.mrb[29].mxu1 }
 0x256   : > { %v1019_v11 = vmul.f32 %v974_v7, %v780_v10 }
 0x257   : > { %1052 = vst [vmem:[%s1980_s17 + $0xe8] sm:$0xff] %v1020_v9 }
 0x258   : > { %1051 = vst [vmem:[%s1980_s17 + $0xe0] sm:$0xff] %v1019_v11  ;;  %v1440_v13 = vpop.f32.mrb[30].mxu1 }
 0x259   : > { %v1022_v15 = vmul.f32 %v1440_v13, %v989_v12  ;;  %v790_v16 = vpop.f32.mrb[31].mxu1 }
 0x25a   : > { %v1021_v17 = vmul.f32 %v984_v14, %v790_v16 }
 0x25b   : > { %1054 = vst [vmem:[%s1980_s17 + $0xf8] sm:$0xff] %v1022_v15 }
 0x25c   : > { %1053 = vst [vmem:[%s1980_s17 + $0xf0] sm:$0xff] %v1021_v17 }
 0x25d   : > { %1641 = shalt.err (!%p1638_p11)
}
 0x25e   : > { %s1642_s11 = scalar_lea.hbm %s2017_s30, 4096  ;;  %s1646_s14 = scalar_lea.hbm %s2071_s5, 8192 }
 0x25f   : > { %p1643_p13 = scmp.ne.s32.totalorder %s2017_s30, %s1642_s11  ;;  %p1647_p6 = scmp.lt.u32.totalorder %s2017_s30, %s2071_s5 }
 0x260   : > { %p1648_p9 = scmp.lt.u32.totalorder %s1646_s14, %s1642_s11  ;;  %p1650_p12 = scmp.lt.u32.totalorder %s1642_s11, %s2017_s30 }
 0x261   : > { %p1644_p5 = pnand %p1643_p13, %p2084_p1 }
 0x262   : > { %p1649_p10 = por %p1648_p9, %p1647_p6 }
 0x263   : > { %p1645_p0 = pneg %p1644_p5 }
 0x264   : > { %p1651_p2 = por %p1650_p12, %p1649_p10 }
 0x266   : > { %p1652_p3 = pnand %p1651_p2, %p1645_p0 }
 0x268   : > { %1655 = shalt.err (!%p1652_p3)
}
 0x269   : > { %s1706_s17 = smov 128   ;;  %s1707_s7 = smov 8  }
 0x26a   : > { %1513 = dma.vmem_to_hbm [thread:$0]  (%p2084_p1), %s2019_s23, 4096, %s2017_s30, %s2025_s22, %s1706_s17, %s1706_s17, %s1707_s7  }
 0x26b PF: > { %p1530_p4 = scmp.ge.s32.totalorder %s1698_s21, 2  ;;  %s1084_s6 = sand.u32 1, %s1686_s18  }
 0x26c   : > { %p2085_p7 = scmp.ne.s32.totalorder %s2076_s29, 0  ;;  %s1085_s8 = scalar_lea.sflag [#allocation4], %s1084_s6 }
 0x26e   : > { %p1523_p8 = pnand %p1530_p4, %p2085_p7 }
 0x270   : > { %1681 = dma.done.wait (!%p1523_p8), %s1085_s8, 4096  }
 0x271   : > { %1683 = vsyncadd (!%p1523_p8), %s1085_s8, 4294963200  ;;  %p17_p11 = scmp.ge.s32.totalorder %s1763_s24, 4   ;;  %s2086_s18 = smov %s1690_s19 }
 0x272   : > { %s2087_s19 = smov %s1694_s20  ;;  %s2088_s20 = smov %s1774_s27 }
 0x273   : > { %s2089_s21 = smov %s1763_s24  ;;  %19 = sbr.rel (!%p17_p11) target bundleno = 5 (0x5), region = 87 }
 0x27a   :  { %1090 = vsyncpa [#allocation3], 1 }
 0x27b   :  { %1092 = vsyncpa [#allocation3 + $0x1], 1 }
 0x27c   :  { %1093 = vsyncpa [#allocation6], 1 }
 0x27d   :  { %1094 = vsyncpa [#allocation4], 1 }
 0x27e   :  { %1096 = vsyncpa [#allocation4 + $0x1], 1 }

</bundles_post_ra>
